<compile_context>
chip_gen: v5e
topology: v5e:2x2
jax: 0.10.0
libtpu: 0.0.40
codegen_flags: <defaults>
</compile_context>

<pallas_src>
import jax
import jax.numpy as jnp
from jax import lax
from jax.experimental import pallas as pl
from jax.experimental.pallas import tpu as pltpu

_EPS = 1e-12  # torch.nn.functional.normalize default eps

# Per-grid-step VMEM footprint target (fits v7x's 32 MiB default scoped
# budget with headroom; well under v5e/v6e once vmem_limit_bytes is raised).
_STEP_VMEM_BUDGET = 28 * 1024 * 1024
_SMALL_PATH_MAX_M = 1024   # "cover all columns in one tile" cutoff
_KTILE_MIN_D = 2048        # K-tile the feature dim beyond this
_KTILE = 512               # lane-aligned K chunk


def _round_up(x: int, m: int) -> int:
    return (x + m - 1) // m * m


def _gram_kernel(row_ref, col_ref, out_ref, acc_ref):
    """Pure-MXU Gram tile: acc += row_block @ col_block.T, K-tiled.

    row_ref: (tile_m, tk) block of the (already L2-normalized) embeddings
    col_ref: (tile_n, tk) block of the same array
    out_ref: (tile_m, tile_n) output tile
    acc_ref: (tile_m, tile_n) f32 VMEM accumulator (persists across K steps)
    """
    @pl.when(pl.program_id(2) == 0)
    def _init():
        acc_ref[...] = jnp.zeros_like(acc_ref)

    # Transposed-RHS contraction over the feature chunk: no transpose, no
    # concat, no normalization inside the kernel.
    acc_ref[...] += lax.dot_general(
        row_ref[...], col_ref[...],
        dimension_numbers=(((1,), (1,)), ((), ())),
        preferred_element_type=jnp.float32,
    )

    @pl.when(pl.program_id(2) == pl.num_programs(2) - 1)
    def _store():
        out_ref[...] = acc_ref[...].astype(out_ref.dtype)


def cosine_similarity(emb_i: jax.Array, emb_j: jax.Array,
                      *, _force_general: bool = False) -> jax.Array:
    """Pallas equivalent of CosineSimilarity.forward.

    emb_i, emb_j: (B, D) float arrays.  Returns the (2B, 2B) cosine-similarity
    matrix.  `_force_general` is a test-only knob that bypasses the
    small-problem fast path so the tiled/K-accumulated path can be validated
    at small shapes.
    """
    assert emb_i.shape == emb_j.shape and emb_i.ndim == 2
    B, D = emb_i.shape
    M = 2 * B
    out_dtype = jnp.promote_types(emb_i.dtype, emb_j.dtype)
    b_in = jnp.dtype(out_dtype).itemsize
    b_out = b_in

    # ---- Hoisted normalization: fused into the XLA-side concat/stage pass.
    # rsqrt(max(||x||^2, eps^2)) == 1 / max(||x||, eps)  (matches F.normalize).
    ef = jnp.concatenate([emb_i, emb_j], axis=0).astype(jnp.float32)
    inv = lax.rsqrt(
        jnp.maximum(jnp.sum(ef * ef, axis=1, keepdims=True), _EPS * _EPS))
    z = (ef * inv).astype(out_dtype)          # MXU operand dtype

    def step_bytes(tm, tn, tk):
        # double-buffered row/col input blocks + double-buffered output tile
        # + f32 accumulator scratch.
        return 2 * (tm + tn) * tk * b_in + 2 * tm * tn * b_out + tm * tn * 4

    m_align = _round_up(M, 128)
    small = (
        not _force_general
        and m_align <= _SMALL_PATH_MAX_M
        and step_bytes(max(m_align // 2, 128), m_align, D) <= _STEP_VMEM_BUDGET
    )

    if small:
        # Small-problem path: one column tile covering all of M, at most two
        # "parallel" row tiles (so both v7x TensorCores get work); no
        # K-tiling (the whole feature dim fits comfortably in VMEM).
        m_pad = m_align
        tile_n = m_pad
        tile_m = m_pad if m_pad <= 128 else m_pad // 2
        tk = D
        d_pad = D
    else:
        tile_n = 256                           # lane-dense output stores
        if D > _KTILE_MIN_D:
            tk = _KTILE                        # per-step VMEM independent of D
            d_pad = _round_up(D, tk)
        else:
            tk = D
            d_pad = D
        # Grow tile_m while it (a) fits the per-step VMEM budget and
        # (b) does not blow up row padding (>25% wasted rows).
        tile_m = 256
        for cand in (1024, 512):
            if (step_bytes(cand, tile_n, tk) <= _STEP_VMEM_BUDGET
                    and 4 * (_round_up(M, cand) - M) <= M):
                tile_m = cand
                break
        m_pad = _round_up(M, tile_m)           # tile_m is a multiple of tile_n

    if m_pad != M or d_pad != D:
        # Zero padding is harmless: rows were normalized before padding, and
        # zero rows/columns contribute zeros that are sliced off below.
        z = jnp.pad(z, ((0, m_pad - M), (0, d_pad - D)))

    grid = (m_pad // tile_m, m_pad // tile_n, d_pad // tk)

    # Advisory cost: row blocks re-streamed once per column tile, column
    # blocks once per row tile (no double-charging the deduped block).
    in_bytes = (m_pad * m_pad * d_pad * b_in) // tile_m \
             + (m_pad * m_pad * d_pad * b_in) // tile_n
    out_bytes = m_pad * m_pad * b_out

    fp = step_bytes(tile_m, tile_n, tk)
    # Raise v5e's 16 MiB default scoped limit; footprint targets <= 28 MiB
    # per step, so the limit stays well under v7x's 64 MiB physical VMEM.
    vmem_limit = max(32 * 1024 * 1024,
                     min(int(1.5 * fp) + (8 << 20), 96 * 1024 * 1024))

    out = pl.pallas_call(
        _gram_kernel,
        out_shape=jax.ShapeDtypeStruct((m_pad, m_pad), out_dtype),
        grid_spec=pltpu.PrefetchScalarGridSpec(
            num_scalar_prefetch=0,
            grid=grid,
            in_specs=[
                pl.BlockSpec((tile_m, tk), lambda i, j, k: (i, k)),  # row block
                pl.BlockSpec((tile_n, tk), lambda i, j, k: (j, k)),  # col block
            ],
            out_specs=pl.BlockSpec((tile_m, tile_n), lambda i, j, k: (i, j)),
            scratch_shapes=[pltpu.VMEM((tile_m, tile_n), jnp.float32)],
        ),
        compiler_params=pltpu.CompilerParams(
            dimension_semantics=("parallel", "parallel", "arbitrary"),
            vmem_limit_bytes=vmem_limit,
        ),
        cost_estimate=pl.CostEstimate(
            flops=2 * m_pad * m_pad * d_pad,
            transcendentals=0,
            bytes_accessed=in_bytes + out_bytes,
        ),
    )(z, z)

    return out[:M, :M]


def _reference(emb_i, emb_j):
    """Pure-JAX reference mirroring the PyTorch module."""
    def norm(x):
        n = jnp.linalg.norm(x.astype(jnp.float32), axis=1, keepdims=True)
        return x / jnp.maximum(n, _EPS)
    zz = jnp.concatenate([norm(emb_i), norm(emb_j)], axis=0)
    return jnp.einsum("md,nd->mn", zz, zz, precision=jax.lax.Precision.HIGHEST)


if __name__ == "__main__":
    key = jax.random.PRNGKey(0)
    k1, k2, k3, k4 = jax.random.split(key, 4)

    # 1) Small contrastive-learning embeddings (single-tile small path).
    B, D = 8, 32
    emb_i = jax.random.normal(k1, (B, D), dtype=jnp.float32)
    emb_j = jax.random.normal(k2, (B, D), dtype=jnp.float32)
    out = jax.block_until_ready(cosine_similarity(emb_i, emb_j))
    ref = _reference(emb_i, emb_j)
    assert out.shape == (2 * B, 2 * B)
    assert jnp.allclose(out, ref, atol=1e-5, rtol=1e-5)

    # 2) Padded two-row-tile small path (2B = 320 -> padded to 384).
    B2, D2 = 160, 96
    ei2 = jax.random.normal(k3, (B2, D2), dtype=jnp.float32)
    ej2 = jax.random.normal(k4, (B2, D2), dtype=jnp.float32)
    out2 = jax.block_until_ready(cosine_similarity(ei2, ej2))
    ref2 = _reference(ei2, ej2)
    assert out2.shape == (2 * B2, 2 * B2)
    assert jnp.allclose(out2, ref2, atol=1e-5, rtol=1e-5)

    # 3) Force the general column-/K-tiled accumulator path at a small shape
    #    to validate it end-to-end: grid = (2, 2, 5), tk = 512.
    B3, D3 = 160, 2560
    ei3 = jax.random.normal(k1, (B3, D3), dtype=jnp.float32)
    ej3 = jax.random.normal(k2, (B3, D3), dtype=jnp.float32)
    out3 = jax.block_until_ready(
        cosine_similarity(ei3, ej3, _force_general=True))
    ref3 = _reference(ei3, ej3)
    assert out3.shape == (2 * B3, 2 * B3)
    assert jnp.allclose(out3, ref3, atol=1e-4, rtol=1e-4)

    print("KERNEL_OK")
</pallas_src>

<mosaic_0001>
module attributes {stable_mosaic.version = 11 : i64} {
  func.func @_gram_kernel(%arg0: i32, %arg1: i32, %arg2: i32, %arg3: memref<128x32xf32, #tpu.memory_space<vmem>>, %arg4: memref<128x32xf32, #tpu.memory_space<vmem>>, %arg5: memref<128x128xf32, #tpu.memory_space<vmem>>, %arg6: memref<128x128xf32, #tpu.memory_space<vmem>>) attributes {dimension_semantics = [#tpu.dimension_semantics<parallel>, #tpu.dimension_semantics<parallel>, #tpu.dimension_semantics<arbitrary>], iteration_bounds = array<i64: 1, 1, 1>, scalar_prefetch = 0 : i64, scratch_operands = 1 : i64, tpu.core_type = #tpu.core_type<tc>, window_params = [{transform_indices = @transform_0, window_bounds = array<i64: 128, 32>}, {transform_indices = @transform_1, window_bounds = array<i64: 128, 32>}, {transform_indices = @transform_2, window_bounds = array<i64: 128, 128>}]} {
    %c0_i32 = arith.constant 0 : i32
    %0 = arith.cmpi eq, %arg2, %c0_i32 : i32
    %1 = arith.extui %0 : i1 to i32
    %c0_i32_0 = arith.constant 0 : i32
    %2 = arith.cmpi ne, %1, %c0_i32_0 : i32
    scf.if %2 {
      %cst_10 = arith.constant 0.000000e+00 : f32
      %12 = vector.broadcast %cst_10 : f32 to vector<128x128xf32>
      %c0_11 = arith.constant 0 : index
      %c0_12 = arith.constant 0 : index
      %13 = vector.load %arg6[%c0_11, %c0_12] : memref<128x128xf32, #tpu.memory_space<vmem>>, vector<128x128xf32>
      tpu.vector_store %arg6[%c0_11, %c0_12], %12 {strides = array<i32>} : memref<128x128xf32, #tpu.memory_space<vmem>>, vector<128x128xf32>,
    } else {
    }
    %c0 = arith.constant 0 : index
    %c0_1 = arith.constant 0 : index
    %3 = vector.load %arg6[%c0, %c0_1] : memref<128x128xf32, #tpu.memory_space<vmem>>, vector<128x128xf32>
    %c0_2 = arith.constant 0 : index
    %c0_3 = arith.constant 0 : index
    %4 = vector.load %arg3[%c0_2, %c0_3] : memref<128x32xf32, #tpu.memory_space<vmem>>, vector<128x32xf32>
    %c0_4 = arith.constant 0 : index
    %c0_5 = arith.constant 0 : index
    %5 = vector.load %arg4[%c0_4, %c0_5] : memref<128x32xf32, #tpu.memory_space<vmem>>, vector<128x32xf32>
    %cst = arith.constant dense<0.000000e+00> : vector<128x128xf32>
    %6 = tpu.matmul %4, %5, %cst {dimension_numbers = #tpu.dot_dimension_numbers<[1], [1], [0], [0], [0, 0, 1, 0], [], []>} : vector<128x32xf32>, vector<128x32xf32>, vector<128x128xf32> -> vector<128x128xf32>
    %7 = arith.addf %3, %6 : vector<128x128xf32>
    %c0_6 = arith.constant 0 : index
    %c0_7 = arith.constant 0 : index
    %8 = vector.load %arg6[%c0_6, %c0_7] : memref<128x128xf32, #tpu.memory_space<vmem>>, vector<128x128xf32>
    tpu.vector_store %arg6[%c0_6, %c0_7], %7 {strides = array<i32>} : memref<128x128xf32, #tpu.memory_space<vmem>>, vector<128x128xf32>,
    %c0_i32_8 = arith.constant 0 : i32
    %9 = arith.cmpi eq, %arg2, %c0_i32_8 : i32
    %10 = arith.extui %9 : i1 to i32
    %c0_i32_9 = arith.constant 0 : i32
    %11 = arith.cmpi ne, %10, %c0_i32_9 : i32
    scf.if %11 {
      %c0_10 = arith.constant 0 : index
      %c0_11 = arith.constant 0 : index
      %12 = vector.load %arg6[%c0_10, %c0_11] : memref<128x128xf32, #tpu.memory_space<vmem>>, vector<128x128xf32>
      %c0_12 = arith.constant 0 : index
      %c0_13 = arith.constant 0 : index
      %13 = vector.load %arg5[%c0_12, %c0_13] : memref<128x128xf32, #tpu.memory_space<vmem>>, vector<128x128xf32>
      tpu.vector_store %arg5[%c0_12, %c0_13], %12 {strides = array<i32>} : memref<128x128xf32, #tpu.memory_space<vmem>>, vector<128x128xf32>,
    } else {
    }
    return
  }
  func.func @transform_0(%arg0: i32, %arg1: i32, %arg2: i32) -> (i32, i32) {
    %c0_i32 = arith.constant 0 : i32
    return %arg0, %arg2 : i32, i32
  }
  func.func @transform_1(%arg0: i32, %arg1: i32, %arg2: i32) -> (i32, i32) {
    %c0_i32 = arith.constant 0 : i32
    return %arg1, %arg2 : i32, i32
  }
  func.func @transform_2(%arg0: i32, %arg1: i32, %arg2: i32) -> (i32, i32) {
    %c0_i32 = arith.constant 0 : i32
    return %arg0, %arg1 : i32, i32
  }
}

</mosaic_0001>

<bundles_post_ra>
// kernel: tpu_custom_call.1
= control target key start
LH: loop header
LB: loop body
LE: loop exit
PB: predicated region body
PF: predicated region fallthrough
CT: control target
= control target key end

     0   :  { %vm80_vm0 = vcmask 261120   ;;  %s633_s0 = inlined_call_operand.vmem [shape: f32[128,32], index: 0, kind: input, shape index: {}]   ;;  %s634_s1 = inlined_call_operand.vmem [shape: f32[128,32], index: 1, kind: input, shape index: {}]   ;;  %s635_s2 = inlined_call_operand.hbm [shape: f32[128,128], index: 2, kind: output, shape index: {}]  }
   0x1   :  { %v79_v0 = vld [vmem:[%s634_s1 + $0x78] sm:$0xff]  ;;  %v78_v1 = vld [vmem:[%s634_s1 + $0x70] sm:$0xff] }
   0x2   :  { %360 = vmatpush.xpose.msk.msra.mxu2 %vm80_vm0, %v79_v0  ;;  %361 = vmatpush.xpose.msk.msra.mxu3 %vm80_vm0, %v79_v0 }
   0x3   :  { %327 = vmatpush.xpose.msk.msra.mxu0 %vm80_vm0, %v79_v0  ;;  %359 = vmatpush.xpose.msk.msra.mxu1 %vm80_vm0, %v79_v0 }
   0x4   :  { %7 = vsyncpa [#allocation4], 0  ;;  %v77_v2 = vld [vmem:[%s634_s1 + $0x68] sm:$0xff]  ;;  %v76_v3 = vld [vmem:[%s634_s1 + $0x60] sm:$0xff]  ;;  %s315_s18 = sshll.u32 %s635_s2, 4  ;;  %s437_s19 = smov 128   ;;  %s316_s18 = int_to_ptr.hbm [resolvable:$true] %s315_s18 }
   0x5   :  { %v75_v4 = vld [vmem:[%s634_s1 + $0x58] sm:$0xff]  ;;  %v74_v5 = vld [vmem:[%s634_s1 + $0x50] sm:$0xff]  ;;  %v73_v6 = vld [vmem:[%s634_s1 + $0x48] sm:$0xff]  ;;  %s438_s20 = smov 8  }
   0x6   :  { %363 = vmatpush.xpose.msk.msra.mxu2 %vm80_vm0, %v78_v1  ;;  %364 = vmatpush.xpose.msk.msra.mxu3 %vm80_vm0, %v78_v1  ;;  %v72_v7 = vld [vmem:[%s634_s1 + $0x40] sm:$0xff]  ;;  %v71_v8 = vld [vmem:[%s634_s1 + $0x38] sm:$0xff]  ;;  %v70_v9 = vld [vmem:[%s634_s1 + $0x30] sm:$0xff] }
   0x7   :  { %328 = vmatpush.xpose.msk.msra.mxu0 %vm80_vm0, %v78_v1  ;;  %362 = vmatpush.xpose.msk.msra.mxu1 %vm80_vm0, %v78_v1  ;;  %v69_v10 = vld [vmem:[%s634_s1 + $0x28] sm:$0xff]  ;;  %v68_v11 = vld [vmem:[%s634_s1 + $0x20] sm:$0xff]  ;;  %v67_v12 = vld [vmem:[%s634_s1 + $0x18] sm:$0xff] }
   0x8   :  { %v66_v13 = vld [vmem:[%s634_s1 + $0x10] sm:$0xff]  ;;  %v65_v14 = vld [vmem:[%s634_s1 + $0x8] sm:$0xff]  ;;  %v64_v15 = vld [vmem:[%s634_s1] sm:$0xff] }
   0x9   :  { %v56_v16 = vld [vmem:[%s633_s0 + $0x40] sm:$0xff]  ;;  %v57_v20 = vld [vmem:[%s633_s0 + $0x48] sm:$0xff]  ;;  %v58_v24 = vld [vmem:[%s633_s0 + $0x50] sm:$0xff] }
   0xa   :  { %366 = vmatpush.xpose.msk.msra.mxu2 %vm80_vm0, %v77_v2  ;;  %367 = vmatpush.xpose.msk.msra.mxu3 %vm80_vm0, %v77_v2  ;;  %v60_v17 = vld [vmem:[%s633_s0 + $0x60] sm:$0xff]  ;;  %v61_v21 = vld [vmem:[%s633_s0 + $0x68] sm:$0xff]  ;;  %v62_v25 = vld [vmem:[%s633_s0 + $0x70] sm:$0xff] }
   0xb   :  { %329 = vmatpush.xpose.msk.msra.mxu0 %vm80_vm0, %v77_v2  ;;  %365 = vmatpush.xpose.msk.msra.mxu1 %vm80_vm0, %v77_v2  ;;  %v48_v18 = vld [vmem:[%s633_s0] sm:$0xff]  ;;  %v49_v22 = vld [vmem:[%s633_s0 + $0x8] sm:$0xff]  ;;  %v50_v26 = vld [vmem:[%s633_s0 + $0x10] sm:$0xff] }
   0xc   :  { %v52_v19 = vld [vmem:[%s633_s0 + $0x20] sm:$0xff]  ;;  %v53_v23 = vld [vmem:[%s633_s0 + $0x28] sm:$0xff]  ;;  %v54_v27 = vld [vmem:[%s633_s0 + $0x30] sm:$0xff] }
   0xd   :  { %v59_v28 = vld [vmem:[%s633_s0 + $0x58] sm:$0xff] }
   0xe   :  { %369 = vmatpush.xpose.msk.msra.mxu2 %vm80_vm0, %v76_v3  ;;  %370 = vmatpush.xpose.msk.msra.mxu3 %vm80_vm0, %v76_v3  ;;  %v63_v29 = vld [vmem:[%s633_s0 + $0x78] sm:$0xff] }
   0xf   :  { %330 = vmatpush.xpose.msk.msra.mxu0 %vm80_vm0, %v76_v3  ;;  %368 = vmatpush.xpose.msk.msra.mxu1 %vm80_vm0, %v76_v3  ;;  %v51_v30 = vld [vmem:[%s633_s0 + $0x18] sm:$0xff] }
  0x10   :  { %v55_v31 = vld [vmem:[%s633_s0 + $0x38] sm:$0xff]  ;;  %s436_s0 = smov [#allocation3]  }
  0x11   :  { %s313_s16 = sshll.u32 %s436_s0, 4  ;;  %s314_s16 = int_to_ptr.vmem [resolvable:$true] %s313_s16 }
  0x12   :  { %372 = vmatpush.xpose.msk.msra.mxu2 %vm80_vm0, %v75_v4  ;;  %373 = vmatpush.xpose.msk.msra.mxu3 %vm80_vm0, %v75_v4 }
  0x13   :  { %331 = vmatpush.xpose.msk.msra.mxu0 %vm80_vm0, %v75_v4  ;;  %371 = vmatpush.xpose.msk.msra.mxu1 %vm80_vm0, %v75_v4 }
  0x16   :  { %375 = vmatpush.xpose.msk.msra.mxu2 %vm80_vm0, %v74_v5  ;;  %376 = vmatpush.xpose.msk.msra.mxu3 %vm80_vm0, %v74_v5 }
  0x17   :  { %332 = vmatpush.xpose.msk.msra.mxu0 %vm80_vm0, %v74_v5  ;;  %374 = vmatpush.xpose.msk.msra.mxu1 %vm80_vm0, %v74_v5 }
  0x1a   :  { %378 = vmatpush.xpose.msk.msra.mxu2 %vm80_vm0, %v73_v6  ;;  %379 = vmatpush.xpose.msk.msra.mxu3 %vm80_vm0, %v73_v6 }
  0x1b   :  { %333 = vmatpush.xpose.msk.msra.mxu0 %vm80_vm0, %v73_v6  ;;  %377 = vmatpush.xpose.msk.msra.mxu1 %vm80_vm0, %v73_v6 }
  0x1e   :  { %381 = vmatpush.xpose.msk.msra.mxu2 %vm80_vm0, %v72_v7  ;;  %382 = vmatpush.xpose.msk.msra.mxu3 %vm80_vm0, %v72_v7 }
  0x1f   :  { %334 = vmatpush.xpose.msk.msra.mxu0 %vm80_vm0, %v72_v7  ;;  %380 = vmatpush.xpose.msk.msra.mxu1 %vm80_vm0, %v72_v7 }
  0x22   :  { %384 = vmatpush.xpose.msk.msra.mxu2 %vm80_vm0, %v71_v8  ;;  %385 = vmatpush.xpose.msk.msra.mxu3 %vm80_vm0, %v71_v8 }
  0x23   :  { %335 = vmatpush.xpose.msk.msra.mxu0 %vm80_vm0, %v71_v8  ;;  %383 = vmatpush.xpose.msk.msra.mxu1 %vm80_vm0, %v71_v8 }
  0x26   :  { %387 = vmatpush.xpose.msk.msra.mxu2 %vm80_vm0, %v70_v9  ;;  %388 = vmatpush.xpose.msk.msra.mxu3 %vm80_vm0, %v70_v9 }
  0x27   :  { %336 = vmatpush.xpose.msk.msra.mxu0 %vm80_vm0, %v70_v9  ;;  %386 = vmatpush.xpose.msk.msra.mxu1 %vm80_vm0, %v70_v9 }
  0x2a   :  { %390 = vmatpush.xpose.msk.msra.mxu2 %vm80_vm0, %v69_v10  ;;  %391 = vmatpush.xpose.msk.msra.mxu3 %vm80_vm0, %v69_v10 }
  0x2b   :  { %337 = vmatpush.xpose.msk.msra.mxu0 %vm80_vm0, %v69_v10  ;;  %389 = vmatpush.xpose.msk.msra.mxu1 %vm80_vm0, %v69_v10 }
  0x2e   :  { %393 = vmatpush.xpose.msk.msra.mxu2 %vm80_vm0, %v68_v11  ;;  %394 = vmatpush.xpose.msk.msra.mxu3 %vm80_vm0, %v68_v11 }
  0x2f   :  { %338 = vmatpush.xpose.msk.msra.mxu0 %vm80_vm0, %v68_v11  ;;  %392 = vmatpush.xpose.msk.msra.mxu1 %vm80_vm0, %v68_v11 }
  0x32   :  { %396 = vmatpush.xpose.msk.msra.mxu2 %vm80_vm0, %v67_v12  ;;  %397 = vmatpush.xpose.msk.msra.mxu3 %vm80_vm0, %v67_v12 }
  0x33   :  { %339 = vmatpush.xpose.msk.msra.mxu0 %vm80_vm0, %v67_v12  ;;  %395 = vmatpush.xpose.msk.msra.mxu1 %vm80_vm0, %v67_v12 }
  0x36   :  { %399 = vmatpush.xpose.msk.msra.mxu2 %vm80_vm0, %v66_v13  ;;  %400 = vmatpush.xpose.msk.msra.mxu3 %vm80_vm0, %v66_v13 }
  0x37   :  { %340 = vmatpush.xpose.msk.msra.mxu0 %vm80_vm0, %v66_v13  ;;  %398 = vmatpush.xpose.msk.msra.mxu1 %vm80_vm0, %v66_v13 }
  0x3a   :  { %402 = vmatpush.xpose.msk.msra.mxu2 %vm80_vm0, %v65_v14  ;;  %403 = vmatpush.xpose.msk.msra.mxu3 %vm80_vm0, %v65_v14 }
  0x3b   :  { %341 = vmatpush.xpose.msk.msra.mxu0 %vm80_vm0, %v65_v14  ;;  %401 = vmatpush.xpose.msk.msra.mxu1 %vm80_vm0, %v65_v14 }
  0x3e   :  { %405 = vmatpush.xpose.msk.msra.mxu2 %vm80_vm0, %v64_v15  ;;  %406 = vmatpush.xpose.msk.msra.mxu3 %vm80_vm0, %v64_v15 }
  0x3f   :  { %342 = vmatpush.xpose.msk.msra.mxu0 %vm80_vm0, %v64_v15  ;;  %404 = vmatpush.xpose.msk.msra.mxu1 %vm80_vm0, %v64_v15 }
  0x41   :  { %351 = vmatmul.msk.f32.vlgmr.msra.gmra.mxu2 %vm80_vm0, %v56_v16  ;;  %355 = vmatmul.msk.f32.vlgmr.msra.gmra.mxu3 %vm80_vm0, %v60_v17 }
  0x42   :  { %343 = vmatmul.msk.f32.vlgmr.msra.gmra.mxu0 %vm80_vm0, %v48_v18  ;;  %347 = vmatmul.msk.f32.vlgmr.msra.gmra.mxu1 %vm80_vm0, %v52_v19 }
  0x49   :  { %352 = vmatmul.msk.f32.gmra.mxu2 %vm80_vm0, %v57_v20  ;;  %356 = vmatmul.msk.f32.gmra.mxu3 %vm80_vm0, %v61_v21 }
  0x4a   :  { %344 = vmatmul.msk.f32.gmra.mxu0 %vm80_vm0, %v49_v22  ;;  %348 = vmatmul.msk.f32.gmra.mxu1 %vm80_vm0, %v53_v23 }
  0x51   :  { %353 = vmatmul.msk.f32.gmra.mxu2 %vm80_vm0, %v58_v24  ;;  %357 = vmatmul.msk.f32.gmra.mxu3 %vm80_vm0, %v62_v25 }
  0x52   :  { %345 = vmatmul.msk.f32.gmra.mxu0 %vm80_vm0, %v50_v26  ;;  %349 = vmatmul.msk.f32.gmra.mxu1 %vm80_vm0, %v54_v27 }
  0x59   :  { %354 = vmatmul.msk.f32.gmra.mxu2 %vm80_vm0, %v59_v28  ;;  %358 = vmatmul.msk.f32.gmra.mxu3 %vm80_vm0, %v63_v29 }
  0x5a   :  { %346 = vmatmul.msk.f32.gmra.mxu0 %vm80_vm0, %v51_v30  ;;  %350 = vmatmul.msk.f32.gmra.mxu1 %vm80_vm0, %v55_v31 }
  0xbf   :  { %v194_v32 = vpop.f32.mrf.mxu0  ;;  %v206_v33 = vpop.f32.mrf.mxu1 }
  0xc0   :  { %293 = vst [vmem:[#allocation3] sm:$0xff] %v194_v32 }
  0xc1   :  { %297 = vst [vmem:[#allocation3 + $0x20] sm:$0xff] %v206_v33 }
  0xc4   :  { %v218_v34 = vpop.f32.mrf.mxu2  ;;  %v230_v35 = vpop.f32.mrf.mxu3 }
  0xc5   :  { %301 = vst [vmem:[#allocation3 + $0x40] sm:$0xff] %v218_v34 }
  0xc6   :  { %305 = vst [vmem:[#allocation3 + $0x60] sm:$0xff] %v230_v35 }
  0xc7   :  { %v197_v36 = vpop.f32.mrf.mxu0  ;;  %v209_v37 = vpop.f32.mrf.mxu1 }
  0xc8   :  { %294 = vst [vmem:[#allocation3 + $0x8] sm:$0xff] %v197_v36 }
  0xc9   :  { %298 = vst [vmem:[#allocation3 + $0x28] sm:$0xff] %v209_v37 }
  0xcc   :  { %v221_v38 = vpop.f32.mrf.mxu2  ;;  %v233_v39 = vpop.f32.mrf.mxu3 }
  0xcd   :  { %302 = vst [vmem:[#allocation3 + $0x48] sm:$0xff] %v221_v38 }
  0xce   :  { %306 = vst [vmem:[#allocation3 + $0x68] sm:$0xff] %v233_v39 }
  0xcf   :  { %v200_v40 = vpop.f32.mrf.mxu0  ;;  %v212_v41 = vpop.f32.mrf.mxu1 }
  0xd0   :  { %295 = vst [vmem:[#allocation3 + $0x10] sm:$0xff] %v200_v40 }
  0xd1   :  { %299 = vst [vmem:[#allocation3 + $0x30] sm:$0xff] %v212_v41 }
  0xd4   :  { %v224_v42 = vpop.f32.mrf.mxu2  ;;  %v236_v43 = vpop.f32.mrf.mxu3 }
  0xd5   :  { %303 = vst [vmem:[#allocation3 + $0x50] sm:$0xff] %v224_v42 }
  0xd6   :  { %307 = vst [vmem:[#allocation3 + $0x70] sm:$0xff] %v236_v43 }
  0xd7   :  { %v203_v44 = vpop.f32.mrf.mxu0  ;;  %v215_v45 = vpop.f32.mrf.mxu1 }
  0xd8   :  { %296 = vst [vmem:[#allocation3 + $0x18] sm:$0xff] %v203_v44 }
  0xd9   :  { %300 = vst [vmem:[#allocation3 + $0x38] sm:$0xff] %v215_v45 }
  0xdc   :  { %v227_v46 = vpop.f32.mrf.mxu2  ;;  %v239_v47 = vpop.f32.mrf.mxu3 }
  0xdd   :  { %304 = vst [vmem:[#allocation3 + $0x58] sm:$0xff] %v227_v46 }
  0xde   :  { %308 = vst [vmem:[#allocation3 + $0x78] sm:$0xff] %v239_v47 }
  0xdf   :  { %321 = dma.vmem_to_hbm [thread:$0]  %s314_s16, 2048, %s316_s18, [#allocation4], %s437_s19, %s437_s19, %s438_s20  }
  0xe0   :  { %434 = dma.done.wait [#allocation4], 2048  }
  0xe1   :  { %435 = vsyncadd [#allocation4], 4294965248 }
  0xe2   :  { %326 = vsyncpa [#allocation4], 1 }

</bundles_post_ra>
